<compile_context>
chip_gen: v5e
topology: v5e:2x2
jax: 0.10.0
libtpu: 0.0.40
codegen_flags: <defaults>
</compile_context>

<pallas_src>
import functools

import jax
import jax.numpy as jnp
from jax.experimental import pallas as pl
from jax.experimental.pallas import tpu as pltpu


LEAKY_SLOPE = 0.01  # nn.LeakyReLU() default negative_slope


def _round_up(x: int, m: int) -> int:
    return ((x + m - 1) // m) * m


def _mlp_b_kernel(x_ref, w1_ref, b1_ref, w2_ref, b2_ref, o_ref, *,
                  in_size, out_dim):
    # Dropout (do1) is identity at inference.
    x = x_ref[...].astype(jnp.float32)        # (TM, in_size)
    w1 = w1_ref[...].astype(jnp.float32)      # (in_size, FIL_P)

    # fc1 as VPU broadcast-FMAs over the tiny contraction dim (in_size ~ 3);
    # keeps the MXU free and avoids a sub-tile-K matmul.
    h = b1_ref[...].astype(jnp.float32) + x[:, 0:1] * w1[0:1, :]
    for i in range(1, in_size):
        h = h + x[:, i:i + 1] * w1[i:i + 1, :]

    # LeakyReLU (VPU). Dropout (do2) is identity at inference.
    h = jnp.where(h >= 0, h, LEAKY_SLOPE * h)

    # fc2 on the MXU with lane-aligned 128x128 operands; store only the real
    # out_dim lanes into the narrow output block.
    out = jnp.dot(h, w2_ref[...].astype(jnp.float32),
                  preferred_element_type=jnp.float32) + b2_ref[...]
    o_ref[...] = out[:, :out_dim].astype(o_ref.dtype)


def pad_mlp_b_params(w1, b1, w2, b2):
    """Pad parameters once at model load (zero padding is a mathematical no-op).

    w1: (in_size, fil_num) = fc1.weight.T,  b1: (fil_num,)
    w2: (fil_num, out_dim) = fc2.weight.T,  b2: (out_dim,)
    """
    in_size, fil_num = w1.shape
    out_dim = w2.shape[1]
    FIL_P = _round_up(fil_num, 128)            # lane-aligned hidden dim
    OUT_P = _round_up(max(out_dim, 128), 128)  # lane-aligned MXU N dim
    f32 = jnp.float32
    w1_p = jnp.zeros((in_size, FIL_P), f32).at[:, :fil_num].set(w1)
    b1_p = jnp.zeros((1, FIL_P), f32).at[0, :fil_num].set(b1)
    w2_p = jnp.zeros((FIL_P, OUT_P), f32).at[:fil_num, :out_dim].set(w2)
    b2_p = jnp.zeros((1, OUT_P), f32).at[0, :out_dim].set(b2)
    return (w1_p, b1_p, w2_p, b2_p), out_dim


def mlp_b_forward(x, padded_params, out_dim, *, tm=1024):
    """Inference forward of _MLP_B.  x: (B, in_size). Returns (B, out_dim) f32."""
    w1_p, b1_p, w2_p, b2_p = padded_params
    B, in_size = x.shape
    FIL_P = w1_p.shape[1]
    OUT_P = w2_p.shape[1]

    # Batch tile: multiple of 8 sublanes. If the whole batch would fit in one
    # tile but is big enough to split, force >=2 grid steps so both v7x
    # TensorCores get work (harmless on single-TC v5e/v6e).
    B8 = _round_up(B, 8)
    TM = min(_round_up(tm, 8), B8)
    if B8 >= 16 and pl.cdiv(B, TM) < 2:
        TM = _round_up(pl.cdiv(B8, 2), 8)
    grid = (pl.cdiv(B, TM),)

    flops = 2 * B * (in_size * FIL_P + FIL_P * out_dim)
    bytes_accessed = 4 * (B * in_size + w1_p.size + b1_p.size
                          + w2_p.size + b2_p.size + B * out_dim)

    return pl.pallas_call(
        functools.partial(_mlp_b_kernel, in_size=in_size, out_dim=out_dim),
        out_shape=jax.ShapeDtypeStruct((B, out_dim), jnp.float32),
        grid=grid,
        in_specs=[
            pl.BlockSpec((TM, in_size), lambda i: (i, 0)),     # x: batch-tiled, unpadded
            pl.BlockSpec((in_size, FIL_P), lambda i: (0, 0)),  # w1: resident
            pl.BlockSpec((1, FIL_P), lambda i: (0, 0)),        # b1: resident
            pl.BlockSpec((FIL_P, OUT_P), lambda i: (0, 0)),    # w2: resident
            pl.BlockSpec((1, OUT_P), lambda i: (0, 0)),        # b2: resident
        ],
        out_specs=pl.BlockSpec((TM, out_dim), lambda i: (i, 0)),
        compiler_params=pltpu.CompilerParams(
            dimension_semantics=("parallel",)),
        cost_estimate=pl.CostEstimate(
            flops=flops, transcendentals=0, bytes_accessed=bytes_accessed),
    )(x, w1_p, b1_p, w2_p, b2_p)


def reference_forward(x, w1, b1, w2, b2):
    h = x @ w1 + b1
    h = jnp.where(h >= 0, h, LEAKY_SLOPE * h)
    return h @ w2 + b2


if __name__ == "__main__":
    # "only use age gender MMSE" -> in_size = 3; small fil_num, out_dim = 2.
    in_size, fil_num, out_dim = 3, 32, 2

    key = jax.random.PRNGKey(0)
    kx1, kx2, kx3, kw1, kb1, kw2, kb2 = jax.random.split(key, 7)

    # Parameters stored transposed relative to PyTorch:
    # fc1.weight is (fil_num, in_size) -> w1 is (in_size, fil_num), etc.
    w1 = jax.random.normal(kw1, (in_size, fil_num), dtype=jnp.float32) * 0.1
    b1 = jax.random.normal(kb1, (fil_num,), dtype=jnp.float32) * 0.1
    w2 = jax.random.normal(kw2, (fil_num, out_dim), dtype=jnp.float32) * 0.1
    b2 = jax.random.normal(kb2, (out_dim,), dtype=jnp.float32) * 0.1

    # Weight padding hoisted out of the per-call path (done once, at "load").
    padded_params, od = pad_mlp_b_params(w1, b1, w2, b2)

    # Case 1: tiny batch (single grid step).
    B1 = 8
    x1 = jax.random.normal(kx1, (B1, in_size), dtype=jnp.float32)
    out1 = jax.block_until_ready(mlp_b_forward(x1, padded_params, od))
    ref1 = reference_forward(x1, w1, b1, w2, b2)
    assert out1.shape == (B1, out_dim)
    assert jnp.allclose(out1, ref1, atol=1e-5, rtol=1e-5), "mismatch (B=8)"

    # Case 2: batch not a multiple of 8 (ragged single block).
    B2 = 5
    x2 = jax.random.normal(kx2, (B2, in_size), dtype=jnp.float32)
    out2 = jax.block_until_ready(mlp_b_forward(x2, padded_params, od))
    ref2 = reference_forward(x2, w1, b1, w2, b2)
    assert out2.shape == (B2, out_dim)
    assert jnp.allclose(out2, ref2, atol=1e-5, rtol=1e-5), "mismatch (B=5)"

    # Case 3: multi-step ragged grid (exercises tiling + partial last block).
    B3 = 200
    x3 = jax.random.normal(kx3, (B3, in_size), dtype=jnp.float32)
    out3 = jax.block_until_ready(mlp_b_forward(x3, padded_params, od, tm=64))
    ref3 = reference_forward(x3, w1, b1, w2, b2)
    assert out3.shape == (B3, out_dim)
    assert jnp.allclose(out3, ref3, atol=1e-5, rtol=1e-5), "mismatch (B=200)"

    print("KERNEL_OK")
</pallas_src>

<mosaic_0001>
module attributes {stable_mosaic.version = 11 : i64} {
  func.func @_mlp_b_kernel(%arg0: i32, %arg1: memref<8x3xf32, #tpu.memory_space<vmem>>, %arg2: memref<3x128xf32, #tpu.memory_space<vmem>>, %arg3: memref<1x128xf32, #tpu.memory_space<vmem>>, %arg4: memref<128x128xf32, #tpu.memory_space<vmem>>, %arg5: memref<1x128xf32, #tpu.memory_space<vmem>>, %arg6: memref<8x2xf32, #tpu.memory_space<vmem>>) attributes {dimension_semantics = [#tpu.dimension_semantics<parallel>], iteration_bounds = array<i64: 1>, scalar_prefetch = 0 : i64, scratch_operands = 0 : i64, tpu.core_type = #tpu.core_type<tc>, window_params = [{transform_indices = @transform_0, window_bounds = array<i64: 8, 3>}, {pipeline_mode = #tpu.pipeline_mode<synchronous>, transform_indices = @transform_1, window_bounds = array<i64: 3, 128>}, {pipeline_mode = #tpu.pipeline_mode<synchronous>, transform_indices = @transform_2, window_bounds = array<i64: 1, 128>}, {pipeline_mode = #tpu.pipeline_mode<synchronous>, transform_indices = @transform_3, window_bounds = array<i64: 128, 128>}, {pipeline_mode = #tpu.pipeline_mode<synchronous>, transform_indices = @transform_4, window_bounds = array<i64: 1, 128>}, {transform_indices = @transform_5, window_bounds = array<i64: 8, 2>}]} {
    %c0 = arith.constant 0 : index
    %c0_0 = arith.constant 0 : index
    %0 = vector.load %arg1[%c0, %c0_0] : memref<8x3xf32, #tpu.memory_space<vmem>>, vector<8x3xf32>
    %c0_1 = arith.constant 0 : index
    %c0_2 = arith.constant 0 : index
    %1 = vector.load %arg2[%c0_1, %c0_2] : memref<3x128xf32, #tpu.memory_space<vmem>>, vector<3x128xf32>
    %c0_3 = arith.constant 0 : index
    %c0_4 = arith.constant 0 : index
    %2 = vector.load %arg3[%c0_3, %c0_4] : memref<1x128xf32, #tpu.memory_space<vmem>>, vector<1x128xf32>
    %3 = vector.extract_strided_slice %0 {offsets = [0, 0], sizes = [8, 1], strides = [1, 1]} : vector<8x3xf32> to vector<8x1xf32>
    %4 = vector.extract_strided_slice %1 {offsets = [0, 0], sizes = [1, 128], strides = [1, 1]} : vector<3x128xf32> to vector<1x128xf32>
    %5 = vector.broadcast %3 : vector<8x1xf32> to vector<8x128xf32>
    %6 = vector.broadcast %4 : vector<1x128xf32> to vector<8x128xf32>
    %7 = arith.mulf %5, %6 : vector<8x128xf32>
    %8 = vector.broadcast %2 : vector<1x128xf32> to vector<8x128xf32>
    %9 = arith.addf %8, %7 : vector<8x128xf32>
    %10 = vector.extract_strided_slice %0 {offsets = [0, 1], sizes = [8, 1], strides = [1, 1]} : vector<8x3xf32> to vector<8x1xf32>
    %11 = vector.extract_strided_slice %1 {offsets = [1, 0], sizes = [1, 128], strides = [1, 1]} : vector<3x128xf32> to vector<1x128xf32>
    %12 = vector.broadcast %10 : vector<8x1xf32> to vector<8x128xf32>
    %13 = vector.broadcast %11 : vector<1x128xf32> to vector<8x128xf32>
    %14 = arith.mulf %12, %13 : vector<8x128xf32>
    %15 = arith.addf %9, %14 : vector<8x128xf32>
    %16 = vector.extract_strided_slice %0 {offsets = [0, 2], sizes = [8, 1], strides = [1, 1]} : vector<8x3xf32> to vector<8x1xf32>
    %17 = vector.extract_strided_slice %1 {offsets = [2, 0], sizes = [1, 128], strides = [1, 1]} : vector<3x128xf32> to vector<1x128xf32>
    %18 = vector.broadcast %16 : vector<8x1xf32> to vector<8x128xf32>
    %19 = vector.broadcast %17 : vector<1x128xf32> to vector<8x128xf32>
    %20 = arith.mulf %18, %19 : vector<8x128xf32>
    %21 = arith.addf %15, %20 : vector<8x128xf32>
    %cst = arith.constant 0.000000e+00 : f32
    %22 = vector.broadcast %cst : f32 to vector<8x128xf32>
    %23 = arith.cmpf oge, %21, %22 : vector<8x128xf32>
    %cst_5 = arith.constant 0.00999999977 : f32
    %24 = vector.broadcast %cst_5 : f32 to vector<8x128xf32>
    %25 = arith.mulf %24, %21 : vector<8x128xf32>
    %26 = arith.select %23, %21, %25 : vector<8x128xi1>, vector<8x128xf32>
    %c0_6 = arith.constant 0 : index
    %c0_7 = arith.constant 0 : index
    %27 = vector.load %arg4[%c0_6, %c0_7] : memref<128x128xf32, #tpu.memory_space<vmem>>, vector<128x128xf32>
    %cst_8 = arith.constant dense<0.000000e+00> : vector<8x128xf32>
    %28 = tpu.matmul %26, %27, %cst_8 {dimension_numbers = #tpu.dot_dimension_numbers<[1], [0], [0], [1], [0, 0, 1, 1], [], []>} : vector<8x128xf32>, vector<128x128xf32>, vector<8x128xf32> -> vector<8x128xf32>
    %c0_9 = arith.constant 0 : index
    %c0_10 = arith.constant 0 : index
    %29 = vector.load %arg5[%c0_9, %c0_10] : memref<1x128xf32, #tpu.memory_space<vmem>>, vector<1x128xf32>
    %30 = vector.broadcast %29 : vector<1x128xf32> to vector<8x128xf32>
    %31 = arith.addf %28, %30 : vector<8x128xf32>
    %32 = vector.extract_strided_slice %31 {offsets = [0, 0], sizes = [8, 2], strides = [1, 1]} : vector<8x128xf32> to vector<8x2xf32>
    %c0_11 = arith.constant 0 : index
    %c0_12 = arith.constant 0 : index
    %33 = vector.load %arg6[%c0_11, %c0_12] : memref<8x2xf32, #tpu.memory_space<vmem>>, vector<8x2xf32>
    tpu.vector_store %arg6[%c0_11, %c0_12], %32 {strides = array<i32>} : memref<8x2xf32, #tpu.memory_space<vmem>>, vector<8x2xf32>,
    return
  }
  func.func @transform_0(%arg0: i32) -> (i32, i32) {
    %c0_i32 = arith.constant 0 : i32
    %c0_i32_0 = arith.constant 0 : i32
    return %arg0, %c0_i32 : i32, i32
  }
  func.func @transform_1(%arg0: i32) -> (i32, i32) {
    %c0_i32 = arith.constant 0 : i32
    %c0_i32_0 = arith.constant 0 : i32
    %c0_i32_1 = arith.constant 0 : i32
    return %c0_i32, %c0_i32_0 : i32, i32
  }
  func.func @transform_2(%arg0: i32) -> (i32, i32) {
    %c0_i32 = arith.constant 0 : i32
    %c0_i32_0 = arith.constant 0 : i32
    %c0_i32_1 = arith.constant 0 : i32
    return %c0_i32, %c0_i32_0 : i32, i32
  }
  func.func @transform_3(%arg0: i32) -> (i32, i32) {
    %c0_i32 = arith.constant 0 : i32
    %c0_i32_0 = arith.constant 0 : i32
    %c0_i32_1 = arith.constant 0 : i32
    return %c0_i32, %c0_i32_0 : i32, i32
  }
  func.func @transform_4(%arg0: i32) -> (i32, i32) {
    %c0_i32 = arith.constant 0 : i32
    %c0_i32_0 = arith.constant 0 : i32
    %c0_i32_1 = arith.constant 0 : i32
    return %c0_i32, %c0_i32_0 : i32, i32
  }
  func.func @transform_5(%arg0: i32) -> (i32, i32) {
    %c0_i32 = arith.constant 0 : i32
    %c0_i32_0 = arith.constant 0 : i32
    return %arg0, %c0_i32 : i32, i32
  }
}

</mosaic_0001>

<bundles_post_ra>
// kernel: tpu_custom_call.1
= control target key start
LH: loop header
LB: loop body
LE: loop exit
PB: predicated region body
PF: predicated region fallthrough
CT: control target
= control target key end

     0   :  { %10 = vsyncpa [#allocation3], 0  ;;  %s152_s21 = smov [#allocation2]   ;;  %s153_s23 = smov 128   ;;  %s206_s0 = inlined_call_operand.vmem [shape: f32[8,3], index: 0, kind: input, shape index: {}]   ;;  %s207_s1 = inlined_call_operand.vmem [shape: f32[3,128], index: 1, kind: input, shape index: {}]   ;;  %s208_s2 = inlined_call_operand.vmem [shape: f32[1,128], index: 2, kind: input, shape index: {}]   ;;  %s209_s3 = inlined_call_operand.hbm [shape: f32[128,128], index: 3, kind: input, shape index: {}]   ;;  %s210_s4 = inlined_call_operand.vmem [shape: f32[1,128], index: 4, kind: input, shape index: {}]   ;;  %s211_s5 = inlined_call_operand.vmem [shape: f32[8,2], index: 5, kind: output, shape index: {}]  }
   0x1   :  { %s21_s20 = sshll.u32 %s209_s3, 4  ;;  %s23_s22 = sshll.u32 %s152_s21, 4  ;;  %s22_s20 = int_to_ptr.hbm [resolvable:$true] %s21_s20  ;;  %s24_s22 = int_to_ptr.vmem [resolvable:$true] %s23_s22 }
   0x2   :  { %s154_s24 = smov 8  }
   0x3   :  { %29 = dma.hbm_to_vmem [thread:$0]  %s22_s20, 2048, %s24_s22, [#allocation3], %s153_s23, %s153_s23, %s154_s24  }
   0x4   :  { %150 = dma.done.wait [#allocation3], 2048  }
   0x5   :  { %151 = vsyncadd [#allocation3], 4294965248  ;;  %v155_v0 = vmov 0   ;;  %v156_v1 = vmov 2   ;;  %v36_v2 = vld [vmem:[%s206_s0] sm:$0xff]  ;;  %v82_v3 = vld [vmem:[#allocation2 + $0x78] sm:$0xff] }
   0x6   :  { %120 = vset.pattern.permute.xlu0 %v155_v0  ;;  %122 = vset.pattern.permute.xlu1 %v156_v1  ;;  %v81_v4 = vld [vmem:[#allocation2 + $0x70] sm:$0xff]  ;;  %v80_v5 = vld [vmem:[#allocation2 + $0x68] sm:$0xff]  ;;  %v79_v6 = vld [vmem:[#allocation2 + $0x60] sm:$0xff]  ;;  %v157_v8 = vmov 1   ;;  %vm107_vm1 = vcmask 15360  }
   0x7   :  { %41 = vperm.xlu0 %120, %v36_v2   ;;  %58 = vperm.xlu1 %122, %v36_v2   ;;  %v78_v7 = vld [vmem:[#allocation2 + $0x58] sm:$0xff]  ;;  %v77_v9 = vld [vmem:[#allocation2 + $0x50] sm:$0xff]  ;;  %v76_v10 = vld [vmem:[#allocation2 + $0x48] sm:$0xff] }
   0x8   :  { %87 = vmatpush.msra.mxu0 %v82_v3  ;;  %v75_v11 = vld [vmem:[#allocation2 + $0x40] sm:$0xff]  ;;  %v74_v12 = vld [vmem:[#allocation2 + $0x38] sm:$0xff]  ;;  %v73_v13 = vld [vmem:[#allocation2 + $0x30] sm:$0xff] }
   0x9   :  { %v72_v14 = vld [vmem:[#allocation2 + $0x28] sm:$0xff]  ;;  %v71_v15 = vld [vmem:[#allocation2 + $0x20] sm:$0xff]  ;;  %v70_v16 = vld [vmem:[#allocation2 + $0x18] sm:$0xff] }
   0xa   :  { %88 = vmatpush.msra.mxu0 %v81_v4  ;;  %v69_v17 = vld [vmem:[#allocation2 + $0x10] sm:$0xff]  ;;  %v68_v18 = vld [vmem:[#allocation2 + $0x8] sm:$0xff]  ;;  %v67_v19 = vld [vmem:[#allocation2] sm:$0xff] }
   0xb   :  { %v37_v20 = vld [vmem:[%s207_s1] sm:$0x7] }
   0xc   :  { %89 = vmatpush.msra.mxu0 %v80_v5  ;;  %v44_v22 = vperm.slane %v37_v20, 0  ;;  %v124_v23 = vld [vmem:[%s208_s2] ss:$0 sm:$0xff]  ;;  %v54_v25 = vperm.slane %v37_v20, 1  ;;  %v61_v26 = vperm.slane %v37_v20, 2 }
   0xd   :  { %v125_v36 = vld [vmem:[%s210_s4] ss:$0 sm:$0xff] }
   0xe   :  { %90 = vmatpush.msra.mxu0 %v79_v6 }
   0xf   :  { %121 = vset.pattern.permute.xlu0 %v157_v8 }
  0x10   :  { %51 = vperm.xlu0 %121, %v36_v2   ;;  %91 = vmatpush.msra.mxu0 %v78_v7 }
  0x12   :  { %92 = vmatpush.msra.mxu0 %v77_v9 }
  0x14   :  { %93 = vmatpush.msra.mxu0 %v76_v10 }
  0x16   :  { %94 = vmatpush.msra.mxu0 %v75_v11 }
  0x18   :  { %123 = vset.pattern.permute.xlu0 %v156_v1  ;;  %95 = vmatpush.msra.mxu0 %v74_v12 }
  0x1a   :  { %96 = vmatpush.msra.mxu0 %v73_v13 }
  0x1c   :  { %97 = vmatpush.msra.mxu0 %v72_v14 }
  0x1e   :  { %98 = vmatpush.msra.mxu0 %v71_v15 }
  0x20   :  { %99 = vmatpush.msra.mxu0 %v70_v16 }
  0x22   :  { %100 = vmatpush.msra.mxu0 %v69_v17 }
  0x24   :  { %101 = vmatpush.msra.mxu0 %v68_v18 }
  0x26   :  { %102 = vmatpush.msra.mxu0 %v67_v19 }
  0x79   :  { %v42_v21 = vpop.permute.xlu0 %41  ;;  %v59_v27 = vpop.permute.xlu1 %58 }
  0x7a   :  { %v45_v24 = vmul.f32 %v44_v22, %v42_v21  ;;  %v62_v31 = vmul.f32 %v61_v26, %v59_v27 }
  0x7c   :  { %v49_v29 = vadd.f32 %v124_v23, %v45_v24 }
  0x82   :  { %v52_v28 = vpop.permute.xlu0 %51 }
  0x83   :  { %v55_v30 = vmul.f32 %v54_v25, %v52_v28 }
  0x85   :  { %v56_v32 = vadd.f32 %v55_v30, %v49_v29 }
  0x87   :  { %v63_v33 = vadd.f32 %v62_v31, %v56_v32 }
  0x89   :  { %vm64_vm0 = vcmp.ge.f32.partialorder %v63_v33, 0.0  ;;  %v65_v34 = vmul.f32 0.01, %v63_v33 }
  0x8b   :  { %v66_v35 = vsel %vm64_vm0, %v63_v33, %v65_v34 }
  0x8c   :  { %103 = vmatmul.f32.vlgmr.msra.gmra.mxu0 %v66_v35 }
 0x109   :  { %v104_v37 = vpop.f32.mrf.mxu0 }
 0x10a   :  { %v105_v38 = vadd.f32 %v125_v36, %v104_v37 }
 0x10c   :  { %108 = vst.msk [vmem:[%s211_s5] sm:$0xff] %vm107_vm1, %v105_v38 }
 0x10d   :  { %113 = vsyncpa [#allocation3], 1 }

</bundles_post_ra>
